<compile_context>
chip_gen: v6e
topology: v6e:2x2x1
jax: 0.10.0
libtpu: 0.0.40
codegen_flags: <defaults>
</compile_context>

<pallas_src>
from functools import partial

import jax
import jax.numpy as jnp
from jax.experimental import pallas as pl
from jax.experimental.pallas import tpu as pltpu


def _channel_select_kernel(x_ref, mask_ref, o_ref):
    # x_ref: (BR, BC) tile of the (N, C*H*W) slab
    # mask_ref: (1, BC) pre-expanded per-element mask row
    # o_ref: (BR, BC) output tile (aliases x in HBM)
    o_ref[...] = x_ref[...] * mask_ref[...]


def _pick_block(dim, preferred, align):
    """Largest legal block size along a tiled axis.

    A block dim must be a multiple of `align` or equal to the full extent.
    If the full extent fits under `preferred`, use it (always legal); else use
    an `align`-multiple tile and let Pallas mask the edge block.
    """
    if dim <= preferred:
        return dim
    return max(align, (preferred // align) * align)


@partial(jax.jit, static_argnames=("channel_number",))
def channel_selector(x, channel_mask, channel_number):
    """x: (N, C, H, W); channel_mask: 1-D array with len >= channel_number."""
    assert channel_mask.ndim == 1
    N, C, H, W = x.shape
    assert C == channel_number, "mask length must match channel dim after slicing"

    HW = H * W
    CHW = C * HW
    itemsize = jnp.dtype(x.dtype).itemsize
    sublane_align = 8 * (4 // itemsize)          # 8 for f32, 16 for bf16, 32 for int8

    # Host-side (inside jit) layout plumbing: lane-dense slab + expanded mask.
    x2 = x.reshape(N, CHW)
    mask = channel_mask[:channel_number].astype(x.dtype)          # cast once
    mask_row = jnp.broadcast_to(mask[:, None], (C, HW)).reshape(1, CHW)

    # Tile choice: <= 128 rows x 4096 lanes (f32: 2 MiB/buffer). With x + out
    # double-buffered plus the tiny mask row this stays well under 16 MiB.
    block_r = _pick_block(N, 128, sublane_align)
    block_c = _pick_block(CHW, 4096, 128)
    grid = (pl.cdiv(N, block_r), pl.cdiv(CHW, block_c))

    out_flat = pl.pallas_call(
        _channel_select_kernel,
        out_shape=jax.ShapeDtypeStruct((N, CHW), x.dtype),
        grid_spec=pltpu.PrefetchScalarGridSpec(
            num_scalar_prefetch=0,
            grid=grid,
            in_specs=[
                pl.BlockSpec((block_r, block_c), lambda r, c: (r, c)),
                pl.BlockSpec((1, block_c), lambda r, c: (0, c)),
            ],
            out_specs=pl.BlockSpec((block_r, block_c), lambda r, c: (r, c)),
        ),
        input_output_aliases={0: 0},
        compiler_params=pltpu.CompilerParams(
            dimension_semantics=("parallel", "parallel"),
            vmem_limit_bytes=32 * 1024 * 1024,
        ),
    )(x2, mask_row)

    return out_flat.reshape(N, C, H, W)


if __name__ == "__main__":
    key = jax.random.PRNGKey(0)
    kx, km = jax.random.split(key)

    N, C, H, W = 2, 4, 16, 16
    channel_number = C

    x = jax.random.normal(kx, (N, C, H, W), dtype=jnp.float32)
    # Random binary channel mask (as the SPOS supernet would supply).
    channel_mask = (jax.random.uniform(km, (C + 2,)) > 0.5).astype(jnp.float32)

    out = channel_selector(x, channel_mask, channel_number)
    out = jax.block_until_ready(out)

    # Reference check (plain JAX, same semantics as the PyTorch module).
    ref = x * channel_mask[:channel_number].reshape(1, C, 1, 1)
    assert out.shape == x.shape
    assert jnp.allclose(out, ref, atol=0.0, rtol=0.0), "mismatch vs reference"

    print("KERNEL_OK")
</pallas_src>

<mosaic_0001>
module attributes {stable_mosaic.version = 11 : i64} {
  func.func @_channel_select_kernel(%arg0: i32, %arg1: i32, %arg2: memref<2x1024xf32, #tpu.memory_space<vmem>>, %arg3: memref<1x1024xf32, #tpu.memory_space<vmem>>, %arg4: memref<2x1024xf32, #tpu.memory_space<vmem>>) attributes {dimension_semantics = [#tpu.dimension_semantics<parallel>, #tpu.dimension_semantics<parallel>], iteration_bounds = array<i64: 1, 1>, scalar_prefetch = 0 : i64, scratch_operands = 0 : i64, tpu.core_type = #tpu.core_type<tc>, window_params = [{transform_indices = @transform_0, window_bounds = array<i64: 2, 1024>}, {transform_indices = @transform_1, window_bounds = array<i64: 1, 1024>}, {transform_indices = @transform_2, window_bounds = array<i64: 2, 1024>}]} {
    %c0 = arith.constant 0 : index
    %c0_0 = arith.constant 0 : index
    %0 = vector.load %arg2[%c0, %c0_0] : memref<2x1024xf32, #tpu.memory_space<vmem>>, vector<2x1024xf32>
    %c0_1 = arith.constant 0 : index
    %c0_2 = arith.constant 0 : index
    %1 = vector.load %arg3[%c0_1, %c0_2] : memref<1x1024xf32, #tpu.memory_space<vmem>>, vector<1x1024xf32>
    %2 = vector.broadcast %1 : vector<1x1024xf32> to vector<2x1024xf32>
    %3 = arith.mulf %0, %2 : vector<2x1024xf32>
    %c0_3 = arith.constant 0 : index
    %c0_4 = arith.constant 0 : index
    %4 = vector.load %arg4[%c0_3, %c0_4] : memref<2x1024xf32, #tpu.memory_space<vmem>>, vector<2x1024xf32>
    tpu.vector_store %arg4[%c0_3, %c0_4], %3 {strides = array<i32>} : memref<2x1024xf32, #tpu.memory_space<vmem>>, vector<2x1024xf32>,
    return
  }
  func.func @transform_0(%arg0: i32, %arg1: i32) -> (i32, i32) {
    %c0_i32 = arith.constant 0 : i32
    return %arg0, %arg1 : i32, i32
  }
  func.func @transform_1(%arg0: i32, %arg1: i32) -> (i32, i32) {
    %c0_i32 = arith.constant 0 : i32
    %c0_i32_0 = arith.constant 0 : i32
    return %c0_i32, %arg1 : i32, i32
  }
  func.func @transform_2(%arg0: i32, %arg1: i32) -> (i32, i32) {
    %c0_i32 = arith.constant 0 : i32
    return %arg0, %arg1 : i32, i32
  }
}

</mosaic_0001>

<bundles_post_ra>
// kernel: channel_selector.1
= control target key start
LH: loop header
LB: loop body
LE: loop exit
PB: predicated region body
PF: predicated region fallthrough
CT: control target
= control target key end

     0   :  { %v15_v0 = vlaneseq  ;;  %v92_v1 = vmov 1983009808   ;;  %s123_s1 = inlined_call_operand.vmem [shape: f32[1,1024], index: 1, kind: input, shape index: {}]   ;;  %s124_s0 = inlined_call_operand.vmem [shape: f32[2,1024], index: 0, kind: input, shape index: {}, may-alias: {0,2}]   ;;  %s125_s2 = inlined_call_operand.vmem [shape: f32[2,1024], index: 2, kind: output, shape index: {}, may-alias: {0,2}]  }
   0x1   :  { %v50_v2 = vunpack.c.l.s4 %v92_v1  ;;  %v13_v4 = vld [vmem:[%s123_s1] sm:$0xff]  ;;  %v12_v34 = vld [vmem:[%s124_s0 + $0x8] sm:$0xff] }
   0x2   :  { %v16_v3 = vshrl.u32 %v15_v0, 7  ;;  %v11_v28 = vld [vmem:[%s124_s0] sm:$0xff] }
   0x3   :  { %v51_v5 = vunpack.c.0.s8 %v50_v2 }
   0x4   :  { %v17_v6 = vsub.s32 0, %v16_v3  ;;  %v21_v7 = vsub.s32 1, %v16_v3  ;;  %v25_v8 = vsub.s32 2, %v16_v3  ;;  %v29_v9 = vsub.s32 3, %v16_v3 }
   0x5   :  { %v54_v10 = vsub.s32 %v51_v5, %v16_v3  ;;  %v33_v11 = vsub.s32 4, %v16_v3  ;;  %v37_v12 = vsub.s32 5, %v16_v3  ;;  %v41_v13 = vsub.s32 6, %v16_v3 }
   0x6   :  { %v18_v14 = vrot.slane %v13_v4, %v17_v6  ;;  %v22_v15 = vrot.slane %v13_v4, %v21_v7  ;;  %v26_v16 = vrot.slane %v13_v4, %v25_v8  ;;  %v30_v17 = vrot.slane %v13_v4, %v29_v9 }
   0x7   :  { %v34_v18 = vrot.slane %v13_v4, %v33_v11  ;;  %v38_v19 = vrot.slane %v13_v4, %v37_v12  ;;  %v42_v20 = vrot.slane %v13_v4, %v41_v13  ;;  %v45_v21 = vsub.s32 7, %v16_v3 }
   0x8   :  { %v47_v22 = vcombine.low %v18_v14, %v22_v15  ;;  %v48_v23 = vcombine.low %v26_v16, %v30_v17 }
   0x9   :  { %v46_v24 = vrot.slane %v13_v4, %v45_v21  ;;  %v64_v25 = vcombine.low %v34_v18, %v38_v19 }
   0xa   :  { %v55_v26 = vrot.slane %v47_v22, %v54_v10  ;;  %v62_v27 = vrot.slane %v48_v23, %v54_v10 }
   0xb   :  { %v65_v29 = vcombine.low %v42_v20, %v46_v24  ;;  %v72_v30 = vrot.slane %v64_v25, %v54_v10 }
   0xc   :  { %v63_v31 = vcombine.low %v55_v26, %v62_v27 }
   0xd   :  { %v79_v32 = vrot.slane %v65_v29, %v54_v10 }
   0xe   :  { %v83_v33 = vmul.f32 %v63_v31, %v11_v28 }
   0xf   :  { %v80_v35 = vcombine.low %v72_v30, %v79_v32 }
  0x10   :  { %85 = vst [vmem:[%s125_s2] sm:$0xff] %v83_v33 }
  0x11   :  { %v84_v36 = vmul.f32 %v80_v35, %v12_v34 }
  0x13   :  { %86 = vst [vmem:[%s125_s2 + $0x8] sm:$0xff] %v84_v36 }

</bundles_post_ra>
